<compile_context>
chip_gen: v6e
topology: v6e:2x2x1
jax: 0.10.0
libtpu: 0.0.40
codegen_flags: <defaults>
</compile_context>

<pallas_src>
import math
from functools import partial

import jax
import jax.numpy as jnp
from jax import lax
from jax.experimental import pallas as pl
from jax.experimental.pallas import tpu as pltpu


def _round_up(a, b):
    return (a + b - 1) // b * b


# ------------------------------ Pallas kernel --------------------------------

def _deform_conv2d_kernel(base_ref, x_ref, offy_ref, offx_ref, w_ref, b_ref,
                          o_ref, v_ref, *, K, H, Wp, C_in_pad, TP, m_dtype):
    """One (batch element, output-pixel tile) per grid step.

    base_ref : (2, TP)    f32  base sampling coords (y row 0, x row 1)
    x_ref    : (1, C_in_pad, H*Wp)  bf16  input image, channels/W zero-padded
    offy_ref : (1, K*K, TP) f32  dy per tap (+ i*dil folded in host-side)
    offx_ref : (1, K*K, TP) f32  dx per tap (+ j*dil folded in host-side)
    w_ref    : (C_out, K*K*C_in_pad) bf16  tap-major im2col weight
    b_ref    : (C_out, 1)  f32  bias
    o_ref    : (1, C_out, TP) f32  output tile
    v_ref    : (K*K*C_in_pad, TP) bf16  im2col VMEM scratch
    """
    base_y = base_ref[0:1, :]                                   # (1, TP) f32
    base_x = base_ref[1:2, :]                                   # (1, TP) f32
    h_iota = lax.broadcasted_iota(jnp.int32, (H, 1), 0)
    w_iota = lax.broadcasted_iota(jnp.int32, (Wp, 1), 0)

    def tap(k, carry):
        dy = offy_ref[0, pl.ds(k, 1), :]                        # (1, TP) f32
        dx = offx_ref[0, pl.ds(k, 1), :]                        # (1, TP) f32
        py = base_y + dy
        px = base_x + dx

        y0f = jnp.floor(py)
        x0f = jnp.floor(px)
        ly = py - y0f
        lx = px - x0f
        y0 = y0f.astype(jnp.int32)
        x0 = x0f.astype(jnp.int32)

        # Separable bilinear gather factors.  Out-of-range corner indices
        # never match the iota -> all-zero one-hot column, reproducing
        # torchvision's per-corner zero padding (padded W columns of x are
        # zero, so matches there also contribute zero).
        r_y = (jnp.where(h_iota == y0, 1.0 - ly, 0.0) +
               jnp.where(h_iota == y0 + 1, ly, 0.0)).astype(m_dtype)   # (H, TP)
        c_x = (jnp.where(w_iota == x0, 1.0 - lx, 0.0) +
               jnp.where(w_iota == x0 + 1, lx, 0.0)).astype(m_dtype)   # (Wp, TP)

        # Gather matrix for this tap; Wp % 8 == 0 makes the merge of the two
        # leading (sublane) dims a layout no-op.
        m = (r_y[:, None, :] * c_x[None, :, :]).reshape(H * Wp, TP)
        m = m.astype(jnp.bfloat16)

        # Bilinear sampling of all channels as one dense MXU matmul
        # (bf16 operands, f32 accumulation, contraction depth H*Wp).
        v = jnp.dot(x_ref[0], m, preferred_element_type=jnp.float32)   # (C_in_pad, TP)

        row = pl.multiple_of(k * C_in_pad, C_in_pad)            # 8-aligned start
        v_ref[pl.ds(row, C_in_pad), :] = v.astype(jnp.bfloat16)
        return carry

    lax.fori_loop(0, K * K, tap, 0)

    # Single fused output matmul (contraction depth K*K*C_in_pad) + bias.
    o_ref[0] = (jnp.dot(w_ref[...], v_ref[...],
                        preferred_element_type=jnp.float32) + b_ref[...])


# ------------------------------ host wrapper ---------------------------------

def _vmem_budget_bytes():
    try:
        cap = int(pltpu.get_tpu_info().vmem_capacity_bytes)
        cap = max(32 << 20, min(cap, 128 << 20))
    except Exception:
        cap = 64 << 20          # conservative fallback (v7x physical per TC)
    return (cap * 3) // 4


def _has_bf16_vpu():
    # bf16 VALU exists on v6e / v7x; v5e (and older) emulate it -> keep f32.
    try:
        kind = jax.devices()[0].device_kind.lower()
    except Exception:
        return False
    return ("v6" in kind) or ("v7" in kind)


def _pick_tile(P, N, *, footprint, budget):
    """Largest 128-multiple lane tile that fits the VMEM budget, then adjusted
    so v7x's two TensorCores both get at least one 'parallel' grid step."""
    p_ceil = _round_up(max(P, 1), 128)
    tp = min(2048, p_ceil)
    while tp > 128 and footprint(tp) > budget:
        tp -= 128
    n_t = -(-p_ceil // tp)
    if N * n_t < 2 and p_ceil > 128:
        n_t = 2
    tp = min(tp, _round_up(-(-p_ceil // n_t), 128))
    return tp


def deform_conv2d_pallas(x, offset, weight, bias, *, stride, padding, dilation):
    """torchvision.ops.deform_conv2d semantics (offset_groups=1, no mask)."""
    N, C_in, H, W = x.shape
    C_out, _, K, _ = weight.shape
    Ho = (H + 2 * padding - dilation * (K - 1) - 1) // stride + 1
    Wo = (W + 2 * padding - dilation * (K - 1) - 1) // stride + 1
    P = Ho * Wo

    # Sublane padding: channels to a multiple of 8 (full-tile scratch stores,
    # >=8-row gather dot) and W to a multiple of 8 (reshape layout no-op).
    C_in_pad = _round_up(C_in, 8)
    Wp = _round_up(W, 8)

    budget = _vmem_budget_bytes()

    def footprint(tp):                       # per-step VMEM bytes (approx.)
        b = 2 * C_in_pad * H * Wp * 2        # x block, double-buffered (bf16)
        b += 2 * 2 * tp * 4                  # base coords
        b += 2 * 2 * K * K * tp * 4          # off_y / off_x
        b += 2 * C_out * K * K * C_in_pad * 2  # weight
        b += 2 * C_out * tp * 4              # output block
        b += K * K * C_in_pad * tp * 2       # im2col scratch
        b += 2 * H * Wp * tp * 4             # gather matrix m + temporaries
        return b

    TP = _pick_tile(P, N, footprint=footprint, budget=budget)
    n_pt = -(-P // TP)
    P_pad = n_pt * TP

    # ---- host-side layout prep ----
    x_p = jnp.pad(x.astype(jnp.float32),
                  ((0, 0), (0, C_in_pad - C_in), (0, 0), (0, Wp - W)))
    x_flat = x_p.reshape(N, C_in_pad, H * Wp).astype(jnp.bfloat16)

    # De-interleave (dy, dx) planes and fold the static tap offsets in.
    off = offset.reshape(N, K * K, 2, P).astype(jnp.float32)
    kk = jnp.arange(K * K, dtype=jnp.int32)
    ky = (kk // K).astype(jnp.float32) * float(dilation)
    kx = (kk % K).astype(jnp.float32) * float(dilation)
    off_y = off[:, :, 0, :] + ky[None, :, None]
    off_x = off[:, :, 1, :] + kx[None, :, None]
    if P_pad != P:
        pad = ((0, 0), (0, 0), (0, P_pad - P))
        off_y = jnp.pad(off_y, pad)          # padded pixels: garbage out,
        off_x = jnp.pad(off_x, pad)          # sliced off below (no OOB risk)

    # Base sampling coordinates per output pixel (no in-kernel div/mod).
    p_idx = jnp.arange(P_pad, dtype=jnp.int32)
    base = jnp.stack([
        (p_idx // Wo).astype(jnp.float32) * float(stride) - float(padding),
        (p_idx % Wo).astype(jnp.float32) * float(stride) - float(padding),
    ])                                                        # (2, P_pad) f32

    # (C_out, C_in, K, K) -> (C_out, K*K*C_in_pad), tap-major, padded channels
    # zeroed to match the padded im2col rows.
    w_r = jnp.transpose(weight.astype(jnp.float32), (0, 2, 3, 1))
    w_r = jnp.pad(w_r, ((0, 0), (0, 0), (0, 0), (0, C_in_pad - C_in)))
    w_r = w_r.reshape(C_out, K * K * C_in_pad).astype(jnp.bfloat16)
    b_r = bias.reshape(C_out, 1).astype(jnp.float32)

    m_dtype = jnp.bfloat16 if _has_bf16_vpu() else jnp.float32

    kernel = partial(_deform_conv2d_kernel, K=K, H=H, Wp=Wp,
                     C_in_pad=C_in_pad, TP=TP, m_dtype=m_dtype)

    out = pl.pallas_call(
        kernel,
        out_shape=jax.ShapeDtypeStruct((N, C_out, P_pad), jnp.float32),
        grid=(N, n_pt),
        in_specs=[
            pl.BlockSpec((2, TP), lambda n, t: (0, t)),
            pl.BlockSpec((1, C_in_pad, H * Wp), lambda n, t: (n, 0, 0)),
            pl.BlockSpec((1, K * K, TP), lambda n, t: (n, 0, t)),
            pl.BlockSpec((1, K * K, TP), lambda n, t: (n, 0, t)),
            pl.BlockSpec((C_out, K * K * C_in_pad), lambda n, t: (0, 0)),
            pl.BlockSpec((C_out, 1), lambda n, t: (0, 0)),
        ],
        out_specs=pl.BlockSpec((1, C_out, TP), lambda n, t: (n, 0, t)),
        scratch_shapes=[pltpu.VMEM((K * K * C_in_pad, TP), jnp.bfloat16)],
        compiler_params=pltpu.CompilerParams(
            dimension_semantics=("parallel", "parallel"),
            vmem_limit_bytes=int(budget)),
    )(base, x_flat, off_y, off_x, w_r, b_r)

    return out[:, :, :P].reshape(N, C_out, Ho, Wo)


def _plain_conv2d(x, weight, bias, *, stride, padding, dilation):
    """nn.Conv2d forward (self.offset_conv): static taps -> XLA's MXU conv.
    DEFAULT precision per review (HIGHEST forced a slow multi-pass f32 conv)."""
    out = lax.conv_general_dilated(
        x.astype(jnp.float32), weight.astype(jnp.float32),
        window_strides=(stride, stride),
        padding=[(padding, padding), (padding, padding)],
        rhs_dilation=(dilation, dilation),
        dimension_numbers=('NCHW', 'OIHW', 'NCHW'))
    return out + bias.astype(jnp.float32)[None, :, None, None]


def deform_conv2d_module_forward(x, params, *, kernel_size, stride, padding, dilation):
    """Forward pass of the PyTorch DeformConv2d module."""
    # offset = self.offset_conv(x)
    offset = _plain_conv2d(x, params["offset_w"], params["offset_b"],
                           stride=stride, padding=padding, dilation=dilation)
    # out = ops.deform_conv2d(x, offset, self.regular_conv.weight, bias=self.bias, ...)
    return deform_conv2d_pallas(x, offset,
                                params["regular_w"], params["deform_b"],
                                stride=stride, padding=padding, dilation=dilation)


# ----------------------------- pure-JAX reference ----------------------------

def _ref_deform_single(x, offset, weight, bias, stride, pad, dil):
    C_in, H, W = x.shape
    C_out, _, K, _ = weight.shape
    Ho = (H + 2 * pad - dil * (K - 1) - 1) // stride + 1
    Wo = (W + 2 * pad - dil * (K - 1) - 1) // stride + 1
    oh = jnp.arange(Ho, dtype=jnp.float32)[:, None]
    ow = jnp.arange(Wo, dtype=jnp.float32)[None, :]
    out = jnp.zeros((C_out, Ho, Wo), jnp.float32)
    for k in range(K * K):
        i, j = divmod(k, K)
        dy = offset[2 * k]
        dx = offset[2 * k + 1]
        py = oh * stride - pad + i * dil + dy
        px = ow * stride - pad + j * dil + dx
        valid = (py > -1) & (py < H) & (px > -1) & (px < W)
        y0 = jnp.floor(py)
        x0 = jnp.floor(px)
        ly = py - y0
        lx = px - x0

        def samp(yi, xi, coef):
            m = valid & (yi >= 0) & (yi < H) & (xi >= 0) & (xi < W)
            yc = jnp.clip(yi, 0, H - 1).astype(jnp.int32)
            xc = jnp.clip(xi, 0, W - 1).astype(jnp.int32)
            v = x[:, yc, xc]                      # (C_in, Ho, Wo)
            return jnp.where(m, coef, 0.0)[None] * v

        val = (samp(y0, x0, (1 - ly) * (1 - lx)) +
               samp(y0, x0 + 1, (1 - ly) * lx) +
               samp(y0 + 1, x0, ly * (1 - lx)) +
               samp(y0 + 1, x0 + 1, ly * lx))
        out = out + jnp.einsum('oc,chw->ohw', weight[:, :, i, j], val,
                               precision=lax.Precision.HIGHEST)
    return out + bias[:, None, None]


def _ref_deform_conv2d(x, offset, weight, bias, stride, pad, dil):
    f = lambda xs, offs: _ref_deform_single(xs, offs, weight, bias, stride, pad, dil)
    return jax.vmap(f)(x, offset)


# ---------------------------------- driver -----------------------------------

if __name__ == "__main__":
    N, C_in, C_out, H, W = 2, 4, 8, 16, 16
    K, stride, padding, dilation = 3, 1, 1, 1

    key = jax.random.PRNGKey(0)
    k_x, k_ow, k_ob, k_rw = jax.random.split(key, 4)

    x = jax.random.normal(k_x, (N, C_in, H, W), jnp.float32)

    # Deterministic PyTorch-like (kaiming-uniform bound) init for both convs.
    fan_in = C_in * K * K
    bound = 1.0 / math.sqrt(fan_in)
    params = {
        "offset_w": jax.random.uniform(k_ow, (2 * K * K, C_in, K, K),
                                       jnp.float32, -bound, bound),
        "offset_b": jax.random.uniform(k_ob, (2 * K * K,),
                                       jnp.float32, -bound, bound),
        "regular_w": jax.random.uniform(k_rw, (C_out, C_in, K, K),
                                        jnp.float32, -bound, bound),
        # self.bias = nn.Parameter(torch.zeros(out_channels))
        "deform_b": jnp.zeros((C_out,), jnp.float32),
    }

    out = deform_conv2d_module_forward(x, params, kernel_size=K, stride=stride,
                                       padding=padding, dilation=dilation)
    out = jax.block_until_ready(out)
    assert out.shape == (N, C_out, H, W), out.shape

    # Pure-JAX reference of the full forward (offset conv + deformable conv).
    # A plain conv with zero padding == deformable conv with zero offsets.
    Ho = (H + 2 * padding - dilation * (K - 1) - 1) // stride + 1
    Wo = (W + 2 * padding - dilation * (K - 1) - 1) // stride + 1
    zero_off = jnp.zeros((N, 2 * K * K, Ho, Wo), jnp.float32)
    offset_ref = _ref_deform_conv2d(x, zero_off, params["offset_w"],
                                    params["offset_b"], stride, padding, dilation)
    out_ref = _ref_deform_conv2d(x, offset_ref, params["regular_w"],
                                 params["deform_b"], stride, padding, dilation)

    max_err = float(jnp.max(jnp.abs(out - out_ref)))
    # Tolerance accounts for bf16 MXU operands (x, gather matrix, im2col,
    # weight; ~2^-9 relative each, f32 accumulation) and the DEFAULT-precision
    # offset conv, compared against an all-f32 HIGHEST-precision reference.
    assert max_err < 4e-2, f"max abs err too large: {max_err}"

    print("KERNEL_OK")
</pallas_src>

<mosaic_0001>
module attributes {stable_mosaic.version = 11 : i64} {
  func.func @_deform_conv2d_kernel(%arg0: i32, %arg1: i32, %arg2: memref<2x256xf32, #tpu.memory_space<vmem>>, %arg3: memref<1x8x256xbf16, #tpu.memory_space<vmem>>, %arg4: memref<1x9x256xf32, #tpu.memory_space<vmem>>, %arg5: memref<1x9x256xf32, #tpu.memory_space<vmem>>, %arg6: memref<8x72xbf16, #tpu.memory_space<vmem>>, %arg7: memref<8x1xf32, #tpu.memory_space<vmem>>, %arg8: memref<1x8x256xf32, #tpu.memory_space<vmem>>, %arg9: memref<72x256xbf16, #tpu.memory_space<vmem>>) attributes {dimension_semantics = [#tpu.dimension_semantics<parallel>, #tpu.dimension_semantics<parallel>], iteration_bounds = array<i64: 2, 1>, scalar_prefetch = 0 : i64, scratch_operands = 1 : i64, tpu.core_type = #tpu.core_type<tc>, window_params = [{transform_indices = @transform_0, window_bounds = array<i64: 2, 256>}, {transform_indices = @transform_1, window_bounds = array<i64: 1, 8, 256>}, {transform_indices = @transform_2, window_bounds = array<i64: 1, 9, 256>}, {transform_indices = @transform_3, window_bounds = array<i64: 1, 9, 256>}, {pipeline_mode = #tpu.pipeline_mode<synchronous>, transform_indices = @transform_4, window_bounds = array<i64: 8, 72>}, {pipeline_mode = #tpu.pipeline_mode<synchronous>, transform_indices = @transform_5, window_bounds = array<i64: 8, 1>}, {transform_indices = @transform_6, window_bounds = array<i64: 1, 8, 256>}]} {
    %c0 = arith.constant 0 : index
    %c0_0 = arith.constant 0 : index
    %0 = vector.load %arg2[%c0, %c0_0] : memref<2x256xf32, #tpu.memory_space<vmem>>, vector<1x256xf32>
    %c1 = arith.constant 1 : index
    %c0_1 = arith.constant 0 : index
    %1 = vector.load %arg2[%c1, %c0_1] : memref<2x256xf32, #tpu.memory_space<vmem>>, vector<1x256xf32>
    %2 = tpu.iota {dimensions = array<i32: 0>} : vector<16x1xi32>
    %3 = tpu.iota {dimensions = array<i32: 0>} : vector<16x1xi32>
    %c0_i32 = arith.constant 0 : i32
    %c9_i32 = arith.constant 9 : i32
    %4 = arith.addi %c0_i32, %c9_i32 : i32
    %c1_i32 = arith.constant 1 : i32
    scf.for %arg10 = %c0_i32 to %4 step %c1_i32  : i32 {
      %c0_12 = arith.constant 0 : index
      %14 = arith.index_cast %arg10 : i32 to index
      %c0_13 = arith.constant 0 : index
      %15 = vector.load %arg4[%c0_12, %14, %c0_13] : memref<1x9x256xf32, #tpu.memory_space<vmem>>, vector<1x1x256xf32>
      %16 = vector.shape_cast %15 : vector<1x1x256xf32> to vector<1x256xf32>
      %c0_14 = arith.constant 0 : index
      %17 = arith.index_cast %arg10 : i32 to index
      %c0_15 = arith.constant 0 : index
      %18 = vector.load %arg5[%c0_14, %17, %c0_15] : memref<1x9x256xf32, #tpu.memory_space<vmem>>, vector<1x1x256xf32>
      %19 = vector.shape_cast %18 : vector<1x1x256xf32> to vector<1x256xf32>
      %20 = arith.addf %0, %16 : vector<1x256xf32>
      %21 = arith.addf %1, %19 : vector<1x256xf32>
      %22 = math.floor %20 : vector<1x256xf32>
      %23 = math.floor %21 : vector<1x256xf32>
      %24 = arith.subf %20, %22 : vector<1x256xf32>
      %25 = arith.subf %21, %23 : vector<1x256xf32>
      %26 = arith.fptosi %22 : vector<1x256xf32> to vector<1x256xi32>
      %27 = arith.fptosi %23 : vector<1x256xf32> to vector<1x256xi32>
      %28 = vector.broadcast %2 : vector<16x1xi32> to vector<16x256xi32>
      %29 = vector.broadcast %26 : vector<1x256xi32> to vector<16x256xi32>
      %30 = arith.cmpi eq, %28, %29 : vector<16x256xi32>
      %cst_16 = arith.constant 1.000000e+00 : f32
      %31 = vector.broadcast %cst_16 : f32 to vector<1x256xf32>
      %32 = arith.subf %31, %24 : vector<1x256xf32>
      %cst_17 = arith.constant 0.000000e+00 : f32
      %33 = vector.shape_cast %32 : vector<1x256xf32> to vector<1x256xf32>
      %34 = vector.broadcast %33 : vector<1x256xf32> to vector<16x256xf32>
      %35 = vector.broadcast %cst_17 : f32 to vector<16x256xf32>
      %36 = arith.select %30, %34, %35 : vector<16x256xi1>, vector<16x256xf32>
      %c1_i32_18 = arith.constant 1 : i32
      %37 = vector.broadcast %c1_i32_18 : i32 to vector<1x256xi32>
      %38 = arith.addi %26, %37 : vector<1x256xi32>
      %39 = vector.broadcast %2 : vector<16x1xi32> to vector<16x256xi32>
      %40 = vector.broadcast %38 : vector<1x256xi32> to vector<16x256xi32>
      %41 = arith.cmpi eq, %39, %40 : vector<16x256xi32>
      %cst_19 = arith.constant 0.000000e+00 : f32
      %42 = vector.shape_cast %24 : vector<1x256xf32> to vector<1x256xf32>
      %43 = vector.broadcast %42 : vector<1x256xf32> to vector<16x256xf32>
      %44 = vector.broadcast %cst_19 : f32 to vector<16x256xf32>
      %45 = arith.select %41, %43, %44 : vector<16x256xi1>, vector<16x256xf32>
      %46 = arith.addf %36, %45 : vector<16x256xf32>
      %47 = vector.broadcast %3 : vector<16x1xi32> to vector<16x256xi32>
      %48 = vector.broadcast %27 : vector<1x256xi32> to vector<16x256xi32>
      %49 = arith.cmpi eq, %47, %48 : vector<16x256xi32>
      %cst_20 = arith.constant 1.000000e+00 : f32
      %50 = vector.broadcast %cst_20 : f32 to vector<1x256xf32>
      %51 = arith.subf %50, %25 : vector<1x256xf32>
      %cst_21 = arith.constant 0.000000e+00 : f32
      %52 = vector.shape_cast %51 : vector<1x256xf32> to vector<1x256xf32>
      %53 = vector.broadcast %52 : vector<1x256xf32> to vector<16x256xf32>
      %54 = vector.broadcast %cst_21 : f32 to vector<16x256xf32>
      %55 = arith.select %49, %53, %54 : vector<16x256xi1>, vector<16x256xf32>
      %c1_i32_22 = arith.constant 1 : i32
      %56 = vector.broadcast %c1_i32_22 : i32 to vector<1x256xi32>
      %57 = arith.addi %27, %56 : vector<1x256xi32>
      %58 = vector.broadcast %3 : vector<16x1xi32> to vector<16x256xi32>
      %59 = vector.broadcast %57 : vector<1x256xi32> to vector<16x256xi32>
      %60 = arith.cmpi eq, %58, %59 : vector<16x256xi32>
      %cst_23 = arith.constant 0.000000e+00 : f32
      %61 = vector.shape_cast %25 : vector<1x256xf32> to vector<1x256xf32>
      %62 = vector.broadcast %61 : vector<1x256xf32> to vector<16x256xf32>
      %63 = vector.broadcast %cst_23 : f32 to vector<16x256xf32>
      %64 = arith.select %60, %62, %63 : vector<16x256xi1>, vector<16x256xf32>
      %65 = arith.addf %55, %64 : vector<16x256xf32>
      %66 = vector.shape_cast %46 : vector<16x256xf32> to vector<16x1x256xf32>
      %67 = vector.shape_cast %65 : vector<16x256xf32> to vector<1x16x256xf32>
      %68 = vector.broadcast %66 : vector<16x1x256xf32> to vector<16x16x256xf32>
      %69 = vector.broadcast %67 : vector<1x16x256xf32> to vector<16x16x256xf32>
      %70 = arith.mulf %68, %69 : vector<16x16x256xf32>
      %71 = vector.shape_cast %70 : vector<16x16x256xf32> to vector<256x256xf32>
      %72 = arith.truncf %71 : vector<256x256xf32> to vector<256x256xbf16>
      %c0_24 = arith.constant 0 : index
      %c0_25 = arith.constant 0 : index
      %c0_26 = arith.constant 0 : index
      %73 = vector.load %arg3[%c0_24, %c0_25, %c0_26] : memref<1x8x256xbf16, #tpu.memory_space<vmem>>, vector<1x8x256xbf16>
      %74 = vector.shape_cast %73 : vector<1x8x256xbf16> to vector<8x256xbf16>
      %cst_27 = arith.constant dense<0.000000e+00> : vector<8x256xf32>
      %75 = tpu.matmul %74, %72, %cst_27 {dimension_numbers = #tpu.dot_dimension_numbers<[1], [0], [0], [1], [0, 0, 1, 1], [], []>} : vector<8x256xbf16>, vector<256x256xbf16>, vector<8x256xf32> -> vector<8x256xf32>
      %c8_i32 = arith.constant 8 : i32
      %76 = arith.muli %arg10, %c8_i32 : i32
      %77 = tpu.assume_multiple %76, 8 : i32
      %78 = arith.truncf %75 : vector<8x256xf32> to vector<8x256xbf16>
      %79 = arith.index_cast %77 : i32 to index
      %c0_28 = arith.constant 0 : index
      %80 = vector.load %arg9[%79, %c0_28] : memref<72x256xbf16, #tpu.memory_space<vmem>>, vector<8x256xbf16>
      tpu.vector_store %arg9[%79, %c0_28], %78 {strides = array<i32>} : memref<72x256xbf16, #tpu.memory_space<vmem>>, vector<8x256xbf16>,
    }
    %c9_i32_2 = arith.constant 9 : i32
    %c0_3 = arith.constant 0 : index
    %c0_4 = arith.constant 0 : index
    %5 = vector.load %arg6[%c0_3, %c0_4] : memref<8x72xbf16, #tpu.memory_space<vmem>>, vector<8x72xbf16>
    %c0_5 = arith.constant 0 : index
    %c0_6 = arith.constant 0 : index
    %6 = vector.load %arg9[%c0_5, %c0_6] : memref<72x256xbf16, #tpu.memory_space<vmem>>, vector<72x256xbf16>
    %cst = arith.constant dense<0.000000e+00> : vector<8x256xf32>
    %7 = tpu.matmul %5, %6, %cst {dimension_numbers = #tpu.dot_dimension_numbers<[1], [0], [0], [1], [0, 0, 1, 1], [], []>} : vector<8x72xbf16>, vector<72x256xbf16>, vector<8x256xf32> -> vector<8x256xf32>
    %c0_7 = arith.constant 0 : index
    %c0_8 = arith.constant 0 : index
    %8 = vector.load %arg7[%c0_7, %c0_8] : memref<8x1xf32, #tpu.memory_space<vmem>>, vector<8x1xf32>
    %9 = vector.broadcast %8 : vector<8x1xf32> to vector<8x256xf32>
    %10 = arith.addf %7, %9 : vector<8x256xf32>
    %c0_9 = arith.constant 0 : index
    %c0_10 = arith.constant 0 : index
    %c0_11 = arith.constant 0 : index
    %11 = vector.load %arg8[%c0_9, %c0_10, %c0_11] : memref<1x8x256xf32, #tpu.memory_space<vmem>>, vector<1x8x256xf32>
    %12 = vector.shape_cast %11 : vector<1x8x256xf32> to vector<8x256xf32>
    %13 = vector.shape_cast %10 : vector<8x256xf32> to vector<1x8x256xf32>
    tpu.vector_store %arg8[%c0_9, %c0_10, %c0_11], %13 {strides = array<i32>} : memref<1x8x256xf32, #tpu.memory_space<vmem>>, vector<1x8x256xf32>,
    return
  }
  func.func @transform_0(%arg0: i32, %arg1: i32) -> (i32, i32) {
    %c0_i32 = arith.constant 0 : i32
    %c0_i32_0 = arith.constant 0 : i32
    return %c0_i32, %arg1 : i32, i32
  }
  func.func @transform_1(%arg0: i32, %arg1: i32) -> (i32, i32, i32) {
    %c0_i32 = arith.constant 0 : i32
    %c0_i32_0 = arith.constant 0 : i32
    %c0_i32_1 = arith.constant 0 : i32
    return %arg0, %c0_i32, %c0_i32_0 : i32, i32, i32
  }
  func.func @transform_2(%arg0: i32, %arg1: i32) -> (i32, i32, i32) {
    %c0_i32 = arith.constant 0 : i32
    %c0_i32_0 = arith.constant 0 : i32
    return %arg0, %c0_i32, %arg1 : i32, i32, i32
  }
  func.func @transform_3(%arg0: i32, %arg1: i32) -> (i32, i32, i32) {
    %c0_i32 = arith.constant 0 : i32
    %c0_i32_0 = arith.constant 0 : i32
    return %arg0, %c0_i32, %arg1 : i32, i32, i32
  }
  func.func @transform_4(%arg0: i32, %arg1: i32) -> (i32, i32) {
    %c0_i32 = arith.constant 0 : i32
    %c0_i32_0 = arith.constant 0 : i32
    %c0_i32_1 = arith.constant 0 : i32
    return %c0_i32, %c0_i32_0 : i32, i32
  }
  func.func @transform_5(%arg0: i32, %arg1: i32) -> (i32, i32) {
    %c0_i32 = arith.constant 0 : i32
    %c0_i32_0 = arith.constant 0 : i32
    %c0_i32_1 = arith.constant 0 : i32
    return %c0_i32, %c0_i32_0 : i32, i32
  }
  func.func @transform_6(%arg0: i32, %arg1: i32) -> (i32, i32, i32) {
    %c0_i32 = arith.constant 0 : i32
    %c0_i32_0 = arith.constant 0 : i32
    return %arg0, %c0_i32, %arg1 : i32, i32, i32
  }
}

</mosaic_0001>

<bundles_post_ra>
// kernel: tpu_custom_call.1
= control target key start
LH: loop header
LB: loop body
LE: loop exit
PB: predicated region body
PF: predicated region fallthrough
CT: control target
= control target key end

     0   :  { %s1815_s0 = inlined_call_operand.vmem [shape: f32[2,256], index: 0, kind: input, shape index: {}]   ;;  %s1816_s1 = inlined_call_operand.vmem [shape: bf16[2,8,256], index: 1, kind: input, shape index: {}]   ;;  %s1817_s2 = inlined_call_operand.vmem [shape: f32[2,9,256], index: 2, kind: input, shape index: {}]   ;;  %s1818_s3 = inlined_call_operand.vmem [shape: f32[2,9,256], index: 3, kind: input, shape index: {}]   ;;  %s1819_s4 = inlined_call_operand.vmem [shape: bf16[8,72], index: 4, kind: input, shape index: {}]   ;;  %s1820_s5 = inlined_call_operand.vmem [shape: f32[8,1], index: 5, kind: input, shape index: {}]   ;;  %s1821_s6 = inlined_call_operand.hbm [shape: f32[2,8,256], index: 6, kind: output, shape index: {}]  }
   0x1   :  { %1823 = sst [smem:[#allocation6_spill]] %s1815_s0 }
   0x2   :  { %11 = vsyncpa [#allocation4], 0 }
   0x3   :  { %13 = vsyncpa [#allocation4 + $0x1], 0  ;;  %s1457_s21 = smov 0   ;;  %s1459_s22 = smov 0  }
   0x4   :  { %s1461_s23 = smov 0   ;;  %s1463_s24 = smov 0  }
   0x5   :  { %s1465_s25 = smov 0   ;;  %s1467_s26 = smov 0  }
   0x6 LB: > { %s1201_s27 = sadd.s32 4294967295, %s1413_s26   ;;  %s1202_s28 = sadd.s32 4294967294, %s1413_s26   ;;  %s1413_s26 = sphi %s1467_s26, %s19_s26   ;;  %s1409_s25 = sphi %s1465_s25, %s1832_s25   ;;  %s1405_s24 = sphi %s1463_s24, %s1831_s24   ;;  %s1401_s23 = sphi %s1461_s23, %s1830_s23   ;;  %s1397_s22 = sphi %s1459_s22, %s1829_s22   ;;  %s1393_s21 = sphi %s1457_s21, %s1828_s21  }
   0x7   : > { %s31_s29 = sadd.s32 1, %s1409_s25  ;;  %s190_s30 = sadd.s32 1, %s1401_s23 }
   0x8   : > { %p33_p0 = scmp.ge.s32.totalorder %s31_s29, 2  ;;  %p200_p1 = scmp.ne.s32.totalorder %s1401_s23, %s1397_s22 }
   0x9   : > { %p201_p2 = scmp.eq.s32.totalorder %s1201_s27, 1  ;;  %p206_p3 = scmp.ne.s32.totalorder %s1397_s22, %s1393_s21 }
   0xa   : > { %s1834_s29 = smov (%p33_p0, %s31_s29), 0  ;;  %p207_p5 = scmp.eq.s32.totalorder %s1202_s28, 1 }
   0xb   : > { %p1497_p4 = por %p201_p2, %p200_p1  ;;  %s185_s8 = ssub.s32 %s1409_s25, %s1834_s29 }
   0xc   : > { %p1206_p6 = scmp.ge.s32.totalorder %s1413_s26, 1  ;;  %p188_p7 = scmp.eq.s32.totalorder %s185_s8, 0 }
   0xd   : > { %p1504_p8 = por %p207_p5, %p206_p3  ;;  %p274_p9 = scmp.lt.s32.totalorder %s1413_s26, 3 }
   0xe   : > { %s1510_s10 = scalar_select %p188_p7, %s1401_s23, %s190_s30  }
   0xf   : > { %p275_p10 = pnand %p1206_p6, %p274_p9 }
  0x10   : > { %s1822_s11 = sand.u32 (!%p275_p10), 1, %s1397_s22   ;;  %p333_p11 = scmp.lt.s32.totalorder (!%p275_p10), %s1405_s24, 1 }
  0x11   : > { %278 = sbr.rel (%p275_p10) target bundleno = 567 (0x237), region = 44  ;;  %s1826_s0 = sld [smem:[#allocation6_spill]] (!%p275_p10) }
  0x12   : > { %s1207_s14 = sshll.u32 (!%p275_p10), %s1822_s11, 4 }
  0x13   : > { %s1547_s11 = scalar_lea.vmem (!%p275_p10), [#allocation3], %s1207_s14 }
  0x16   : > { %v363_v1 = vlaneseq  ;;  %s334_s17 = scalar_select %p333_p11, %s1405_s24, 1 }
  0x17   : > { %v1517_v0 = vld [vmem:[%s1826_s0] ss:$2 sm:$0x3]  ;;  %v1524_v2 = vld [vmem:[%s1826_s0 + $0x1] ss:$2 sm:$0x3] }
  0x18   : > { %v1526_v3 = vshrl.u32 %v363_v1, 7  ;;  %s1240_s18 = sshll.u32 %s334_s17, 3  ;;  %s1241_s19 = sshll.u32 %s334_s17, 5 }
  0x19   : > { %s1535_s28 = scalar_lea.vmem %s1816_s1, %s1240_s18  ;;  %s1540_s12 = scalar_lea.vmem %s1817_s2, %s1241_s19 }
  0x1a   : > { %v1530_v4 = vadd.s32 8, %v1526_v3  ;;  %s1545_s16 = scalar_lea.vmem %s1818_s3, %s1241_s19  ;;  %s1549_s0 = smov 0  }
  0x1b LB: >> { %v1555_v5 = vld [vmem:[%s1535_s28] sm:$0xff]  ;;  %s372_s17 = sshra.s32 %s1417_s0, 3  ;;  %s375_s14 = sand.u32 7, %s1417_s0  ;;  %v1566_v13 = vsub.s32 0, %v1526_v3  ;;  %v1569_v17 = vsub.s32 1, %v1526_v3  ;;  %s1417_s0 = sphi %s1549_s0, %s371_s0  }
  0x1c   : >> { %v1218_v6 = vcombine.high %v1555_v5, %v1555_v5  ;;  %s1243_s18 = sshll.u32 %s372_s17, 4  ;;  %v1419_v24 = vmov 1966171168   ;;  %s1219_s30 = sshll.u32 %s1417_s0, 3 }
  0x1d   : >> { %s378_s19 = sadd.s32 %s1243_s18, %s375_s14  ;;  %v518_v25 = vunpack.c.l.s4 %v1419_v24  ;;  %s933_s8 = scalar_lea.vmem [#allocation2], %s1219_s30 }
  0x1e   : >> { %911 = vmatprep.mubr.bf16.mxu0 %v1218_v6  ;;  %s379_s20 = scalar_lea.vmem %s1540_s12, %s378_s19  ;;  %s381_s27 = scalar_lea.vmem %s1545_s16, %s378_s19 }
  0x1f   : >> { %v380_v7 = vld [vmem:[%s379_s20] ss:$8 sm:$0x3]  ;;  %v519_v35 = vunpack.c.0.s8 %v518_v25  ;;  %s371_s0 = sadd.s32 1, %s1417_s0  }
  0x20   : >> { %v382_v8 = vld [vmem:[%s381_s27] ss:$8 sm:$0x3]  ;;  %v383_v9 = vadd.f32 %v380_v7, %v1517_v0  ;;  %p368_p12 = scmp.ge.s32.totalorder %s371_s0, 9  }
  0x21   : >> { %v384_v10 = vadd.f32 %v1524_v2, %v382_v8  ;;  %v1602_v49 = vsub.s32 %v519_v35, %v1526_v3  ;;  %s1246_s12 = sshll.u32 (%p368_p12), %s1405_s24, 8  ;;  %s1067_s16 = sshll.u32 (%p368_p12), %s1547_s11, 4  ;;  %s1768_s16 = int_to_ptr.vmem [resolvable:$true] %s1067_s16 }
  0x22   : >> { %v385_v11 = vfloor.f32 %v383_v9  ;;  %s1766_s18 = scalar_lea.hbm (%p368_p12), %s1821_s6, %s1246_s12  ;;  %s1827_s19 = sand.u32 (%p368_p12), 1, %s1397_s22  }
  0x23   : >> { %v386_v12 = vfloor.f32 %v384_v10  ;;  %s1051_s24 = scalar_lea.sflag (%p368_p12), [#allocation4], %s1827_s19  ;;  %s1333_s20 = scalar_lea.vmem (%p368_p12), %s1768_s16, 256 }
  0x24   : >> { %v387_v14 = vsub.f32 %v383_v9, %v385_v11  ;;  %v1247_v15 = vtrunc.f32 %v385_v11  ;;  %p1334_p13 = scmp.ne.s32.totalorder (%p368_p12), %s1768_s16, %s1333_s20  ;;  %s1421_s27 = smov (%p368_p12), [#allocation3]  }
  0x25   : >> { %v1249_v16 = vtrunc.f32 %v386_v12  ;;  %v388_v21 = vsub.f32 %v384_v10, %v386_v12  ;;  %s1337_s30 = sshll.u32 (%p368_p12), %s1421_s27, 4  ;;  %s1338_s30 = int_to_ptr.vmem [resolvable:$false] %s1337_s30 }
  0x26   : >> { %v1248_v18 = vcvt.f32.s32 %v1247_v15  ;;  %v403_v19 = vsub.f32 1.0, %v387_v14  ;;  %v436_v29 = vrot.slane %v387_v14, %v1566_v13  ;;  %v440_v30 = vrot.slane %v387_v14, %v1569_v17  ;;  %p1335_p0 = pnand (%p368_p12), %p1334_p13, %p1497_p4  ;;  %p1340_p2 = scmp.lt.s32.totalorder (%p368_p12), %s1768_s16, %s1338_s30 }
  0x27   : >> { %v1250_v20 = vcvt.f32.s32 %v1249_v16  ;;  %v463_v34 = vsub.f32 1.0, %v388_v21  ;;  %v496_v48 = vrot.slane %v388_v21, %v1566_v13  ;;  %v500_v50 = vrot.slane %v388_v21, %v1569_v17 }
  0x28   : >> { %v1572_v22 = vrot.slane %v1248_v18, %v1566_v13  ;;  %v1575_v23 = vrot.slane %v1248_v18, %v1569_v17  ;;  %v408_v26 = vrot.slane %v403_v19, %v1566_v13  ;;  %v1579_v27 = vrot.slane %v403_v19, %v1569_v17  ;;  %p1336_p1 = pneg (%p368_p12), %p1335_p0 }
  0x29   : >> { %v419_v28 = vadd.s32 1, %v1248_v18  ;;  %v479_v33 = vadd.s32 1, %v1250_v20  ;;  %v454_v40 = vrot.slane %v1250_v20, %v1566_v13  ;;  %v458_v41 = vrot.slane %v1250_v20, %v1569_v17 }
  0x2a   : >> { %vm399_vm0 = vcmp.eq.s32.totalorder %v1526_v3, %v1572_v22  ;;  %vm400_vm1 = vcmp.eq.s32.totalorder %v1526_v3, %v1575_v23  ;;  %v468_v46 = vrot.slane %v463_v34, %v1566_v13  ;;  %v472_v47 = vrot.slane %v463_v34, %v1569_v17 }
  0x2b   : >> { %v423_v31 = vrot.slane %v419_v28, %v1566_v13  ;;  %v427_v32 = vrot.slane %v419_v28, %v1569_v17  ;;  %v415_v36 = vsel %vm399_vm0, %v408_v26, 0.0  ;;  %v416_v37 = vsel %vm400_vm1, %v1579_v27, 0.0 }
  0x2c   : >> { %v483_v42 = vrot.slane %v479_v33, %v1566_v13  ;;  %v487_v45 = vrot.slane %v479_v33, %v1569_v17  ;;  %vm459_vm4 = vcmp.eq.s32.totalorder %v1526_v3, %v454_v40  ;;  %vm460_vm5 = vcmp.eq.s32.totalorder %v1526_v3, %v458_v41 }
  0x2d   : >> { %vm428_vm2 = vcmp.eq.s32.totalorder %v1526_v3, %v423_v31  ;;  %vm429_vm3 = vcmp.eq.s32.totalorder %v1526_v3, %v427_v32  ;;  %vm461_vm6 = vcmp.eq.s32.totalorder %v1530_v4, %v454_v40  ;;  %vm462_vm7 = vcmp.eq.s32.totalorder %v1530_v4, %v458_v41 }
  0x2e   : >> { %v443_v38 = vsel %vm428_vm2, %v436_v29, 0.0  ;;  %v444_v39 = vsel %vm429_vm3, %v440_v30, 0.0  ;;  %vm488_vm8 = vcmp.eq.s32.totalorder %v1526_v3, %v483_v42  ;;  %vm489_vm9 = vcmp.eq.s32.totalorder %v1526_v3, %v487_v45 }
  0x2f   : >> { %v447_v43 = vadd.f32 %v443_v38, %v415_v36  ;;  %v448_v44 = vadd.f32 %v444_v39, %v416_v37  ;;  %v475_v53 = vsel %vm459_vm4, %v468_v46, 0.0  ;;  %v476_v54 = vsel %vm460_vm5, %v472_v47, 0.0 }
  0x30   : >> { %vm490_vm10 = vcmp.eq.s32.totalorder %v1530_v4, %v483_v42  ;;  %vm491_vm11 = vcmp.eq.s32.totalorder %v1530_v4, %v487_v45  ;;  %v477_v55 = vsel %vm461_vm6, %v468_v46, 0.0  ;;  %v478_v56 = vsel %vm462_vm7, %v472_v47, 0.0 }
  0x31   : >> { %v516_v51 = vcombine.high %v447_v43, %v448_v44  ;;  %v515_v52 = vcombine.low %v447_v43, %v448_v44  ;;  %v503_v57 = vsel %vm488_vm8, %v496_v48, 0.0  ;;  %v504_v59 = vsel %vm489_vm9, %v500_v50, 0.0 }
  0x32   : >> { %vm401_vm12 = vcmp.eq.s32.totalorder %v1530_v4, %v1572_v22  ;;  %vm430_vm13 = vcmp.eq.s32.totalorder %v1530_v4, %v423_v31  ;;  %v505_v61 = vsel %vm490_vm10, %v496_v48, 0.0  ;;  %v506_v62 = vsel %vm491_vm11, %v500_v50, 0.0 }
  0x33   : >> { %v530_v58 = vrot.slane %v516_v51, %v1602_v49  ;;  %v523_v60 = vrot.slane %v515_v52, %v1602_v49  ;;  %v1617_v6 = vadd.f32 %v503_v57, %v475_v53  ;;  %vm402_vm14 = vcmp.eq.s32.totalorder %v1530_v4, %v1575_v23 }
  0x34   : >> { %vm431_vm15 = vcmp.eq.s32.totalorder %v1530_v4, %v427_v32  ;;  %v417_v9 = vsel %vm401_vm12, %v408_v26, 0.0  ;;  %v445_v10 = vsel %vm430_vm13, %v436_v29, 0.0  ;;  %v1623_v11 = vadd.f32 %v504_v59, %v476_v54 }
  0x35   : >> { %v532_v63 = vcombine.high %v530_v58, %v530_v58  ;;  %v546_v1 = vrot.slane %v530_v58, %v1602_v49  ;;  %v1625_v12 = vadd.f32 %v505_v61, %v477_v55  ;;  %v1627_v14 = vadd.f32 %v506_v62, %v478_v56 }
  0x36   : >> { %v531_v15 = vcombine.high %v523_v60, %v523_v60  ;;  %v418_v19 = vsel %vm402_vm14, %v1579_v27, 0.0  ;;  %v446_v20 = vsel %vm431_vm15, %v440_v30, 0.0  ;;  %v1633_v23 = vadd.f32 %v445_v10, %v417_v9 }
  0x37   : >> { %v560_v7 = vrot.slane %v532_v63, %v1602_v49  ;;  %v562_v8 = vcombine.high %v546_v1, %v546_v1  ;;  %v654_v29 = vrot.slane %v546_v1, %v1569_v17  ;;  %v1642_v27 = vrot.slane %v523_v60, %v1602_v49 }
  0x38   : >> { %v553_v31 = vrot.slane %v531_v15, %v1602_v49  ;;  %v1644_v30 = vadd.f32 %v446_v20, %v418_v19  ;;  %v650_v46 = vrot.slane %v546_v1, %v1566_v13  ;;  %vm1000_vm0 = vcmask (%p368_p12), 1043456  }
  0x39   : >> { %v564_v16 = vcombine.high %v560_v7, %v560_v7  ;;  %v670_v18 = vrot.slane %v562_v8, %v1569_v17  ;;  %v666_v21 = vrot.slane %v562_v8, %v1566_v13  ;;  %v662_v22 = vrot.slane %v560_v7, %v1569_v17 }
  0x3a   : >> { %v658_v39 = vrot.slane %v560_v7, %v1566_v13  ;;  %v563_v44 = vcombine.high %v553_v31, %v553_v31  ;;  %v792_v45 = vmul.f32 %v654_v29, %v1623_v11  ;;  %v794_v51 = vmul.f32 %v654_v29, %v1627_v14 }
  0x3b   : >> { %v678_v24 = vrot.slane %v564_v16, %v1569_v17  ;;  %v674_v25 = vrot.slane %v564_v16, %v1566_v13  ;;  %v800_v26 = vmul.f32 %v670_v18, %v1623_v11  ;;  %v802_v28 = vmul.f32 %v670_v18, %v1627_v14 }
  0x3c   : >> { %v799_v36 = vmul.f32 %v666_v21, %v1617_v6  ;;  %v801_v37 = vmul.f32 %v666_v21, %v1625_v12  ;;  %v796_v38 = vmul.f32 %v662_v22, %v1623_v11  ;;  %v798_v43 = vmul.f32 %v662_v22, %v1627_v14 }
  0x3d   : >> { %v804_v32 = vmul.f32 %v678_v24, %v1623_v11  ;;  %v806_v33 = vmul.f32 %v678_v24, %v1627_v14  ;;  %v803_v34 = vmul.f32 %v674_v25, %v1617_v6  ;;  %v805_v35 = vmul.f32 %v674_v25, %v1625_v12 }
  0x3e   : >> { %v852_v42 = vpack.c.bf16 %v802_v28, %v800_v26  ;;  %v851_v47 = vpack.c.bf16 %v801_v37, %v799_v36  ;;  %v795_v48 = vmul.f32 %v658_v39, %v1617_v6  ;;  %v797_v50 = vmul.f32 %v658_v39, %v1625_v12 }
  0x3f   : >> { %v854_v40 = vpack.c.bf16 %v806_v33, %v804_v32  ;;  %v853_v41 = vpack.c.bf16 %v805_v35, %v803_v34  ;;  %v850_v52 = vpack.c.bf16 %v798_v43, %v796_v38  ;;  %v646_v53 = vrot.slane %v563_v44, %v1569_v17 }
  0x40   : >> { %v561_v54 = vcombine.high %v1642_v27, %v1642_v27  ;;  %v566_v55 = vcombine.high %v1633_v23, %v1644_v30  ;;  %v791_v56 = vmul.f32 %v650_v46, %v1617_v6  ;;  %v849_v57 = vpack.c.bf16 %v797_v50, %v795_v48 }
  0x41   : >> { %879 = vmatprep.subr.bf16.mxu0 %v854_v40  ;;  %v848_v58 = vpack.c.bf16 %v794_v51, %v792_v45  ;;  %v793_v59 = vmul.f32 %v650_v46, %v1625_v12  ;;  %v642_v60 = vrot.slane %v563_v44, %v1566_v13  ;;  %v788_v61 = vmul.f32 %v646_v53, %v1623_v11 }
  0x42   : >> { %880 = vmatpush1.bf16.msra.mxu0 %v853_v41  ;;  %v790_v62 = vmul.f32 %v646_v53, %v1627_v14  ;;  %v638_v63 = vrot.slane %v561_v54, %v1569_v17  ;;  %v580_v1 = vrot.slane %v566_v55, %v1602_v49  ;;  %v634_v7 = vrot.slane %v561_v54, %v1566_v13 }
  0x43   : >> { %881 = vmatprep.subr.bf16.mxu0 %v852_v42  ;;  %v847_v9 = vpack.c.bf16 %v793_v59, %v791_v56  ;;  %v787_v10 = vmul.f32 %v642_v60, %v1617_v6  ;;  %v789_v15 = vmul.f32 %v642_v60, %v1625_v12  ;;  %v630_v16 = vrot.slane %v553_v31, %v1569_v17 }
  0x44   : >> { %v582_v8 = vcombine.high %v580_v1, %v580_v1  ;;  %v846_v18 = vpack.c.bf16 %v790_v62, %v788_v61  ;;  %v784_v19 = vmul.f32 %v638_v63, %v1623_v11  ;;  %v786_v20 = vmul.f32 %v638_v63, %v1627_v14 }
  0x45   : >> { %v626_v22 = vrot.slane %v553_v31, %v1566_v13  ;;  %v622_v24 = vrot.slane %v1642_v27, %v1569_v17  ;;  %v565_v25 = vcombine.low %v1633_v23, %v1644_v30  ;;  %v845_v26 = vpack.c.bf16 %v789_v15, %v787_v10 }
  0x46   : >> { %882 = vmatpush1.bf16.msra.mxu0 %v851_v47  ;;  %v610_v21 = vrot.slane %v582_v8, %v1602_v49  ;;  %v783_v28 = vmul.f32 %v634_v7, %v1617_v6  ;;  %v785_v29 = vmul.f32 %v634_v7, %v1625_v12  ;;  %v780_v32 = vmul.f32 %v630_v16, %v1623_v11 }
  0x47   : >> { %883 = vmatprep.subr.bf16.mxu0 %v850_v52  ;;  %v844_v33 = vpack.c.bf16 %v786_v20, %v784_v19  ;;  %v782_v34 = vmul.f32 %v630_v16, %v1627_v14  ;;  %v596_v31 = vrot.slane %v580_v1, %v1602_v49  ;;  %v776_v36 = vmul.f32 %v622_v24, %v1623_v11 }
  0x48   : >> { %v614_v35 = vcombine.high %v610_v21, %v610_v21  ;;  %v618_v23 = vrot.slane %v1642_v27, %v1566_v13  ;;  %v843_v30 = vpack.c.bf16 %v785_v29, %v783_v28  ;;  %v779_v37 = vmul.f32 %v626_v22, %v1617_v6 }
  0x49   : >> { %v781_v38 = vmul.f32 %v626_v22, %v1625_v12  ;;  %v573_v39 = vrot.slane %v565_v25, %v1602_v49  ;;  %v842_v40 = vpack.c.bf16 %v782_v34, %v780_v32  ;;  %v778_v41 = vmul.f32 %v622_v24, %v1627_v14 }
  0x4a   : >> { %884 = vmatpush1.bf16.msra.mxu0 %v849_v57  ;;  %v742_v42 = vrot.slane %v614_v35, %v1569_v17  ;;  %v612_v43 = vcombine.high %v596_v31, %v596_v31  ;;  %v775_v44 = vmul.f32 %v618_v23, %v1617_v6  ;;  %v777_v45 = vmul.f32 %v618_v23, %v1625_v12 }
  0x4b   : >> { %885 = vmatprep.subr.bf16.mxu0 %v848_v58  ;;  %v841_v27 = vpack.c.bf16 %v781_v38, %v779_v37  ;;  %v738_v46 = vrot.slane %v614_v35, %v1566_v13  ;;  %v581_v47 = vcombine.high %v573_v39, %v573_v39  ;;  %v840_v48 = vpack.c.bf16 %v778_v41, %v776_v36 }
  0x4c   : >> { %v836_v50 = vmul.f32 %v742_v42, %v1623_v11  ;;  %v838_v51 = vmul.f32 %v742_v42, %v1627_v14  ;;  %v734_v52 = vrot.slane %v612_v43, %v1569_v17  ;;  %v839_v53 = vpack.c.bf16 %v777_v45, %v775_v44 }
  0x4d   : >> { %v835_v54 = vmul.f32 %v738_v46, %v1617_v6  ;;  %v837_v55 = vmul.f32 %v738_v46, %v1625_v12  ;;  %v730_v56 = vrot.slane %v612_v43, %v1566_v13  ;;  %v603_v57 = vrot.slane %v581_v47, %v1602_v49 }
  0x4e   : >> { %886 = vmatpush1.bf16.msra.mxu0 %v847_v9  ;;  %v870_v58 = vpack.c.bf16 %v838_v51, %v836_v50  ;;  %v832_v59 = vmul.f32 %v734_v52, %v1623_v11  ;;  %v834_v60 = vmul.f32 %v734_v52, %v1627_v14  ;;  %v726_v61 = vrot.slane %v610_v21, %v1569_v17 }
  0x4f   : >> { %887 = vmatprep.subr.bf16.mxu0 %v846_v18  ;;  %v718_v62 = vrot.slane %v596_v31, %v1569_v17  ;;  %v589_v63 = vrot.slane %v573_v39, %v1602_v49  ;;  %v869_v1 = vpack.c.bf16 %v837_v55, %v835_v54  ;;  %v831_v7 = vmul.f32 %v730_v56, %v1617_v6 }
  0x50   : >> { %v833_v8 = vmul.f32 %v730_v56, %v1625_v12  ;;  %v722_v9 = vrot.slane %v610_v21, %v1566_v13  ;;  %v868_v10 = vpack.c.bf16 %v834_v60, %v832_v59  ;;  %v828_v15 = vmul.f32 %v726_v61, %v1623_v11 }
  0x51   : >> { %v830_v16 = vmul.f32 %v726_v61, %v1627_v14  ;;  %v613_v18 = vcombine.high %v603_v57, %v603_v57  ;;  %v714_v19 = vrot.slane %v596_v31, %v1566_v13  ;;  %v611_v24 = vcombine.high %v589_v63, %v589_v63 }
  0x52   : >> { %888 = vmatpush1.bf16.msra.mxu0 %v845_v26  ;;  %v867_v20 = vpack.c.bf16 %v833_v8, %v831_v7  ;;  %v827_v49 = vmul.f32 %v722_v9, %v1617_v6  ;;  %v829_v22 = vmul.f32 %v722_v9, %v1625_v12  ;;  %v824_v21 = vmul.f32 %v718_v62, %v1623_v11 }
  0x53   : >> { %889 = vmatprep.subr.bf16.mxu0 %v844_v33  ;;  %v866_v25 = vpack.c.bf16 %v830_v16, %v828_v15  ;;  %v826_v26 = vmul.f32 %v718_v62, %v1627_v14  ;;  %v710_v28 = vrot.slane %v613_v18, %v1569_v17  ;;  %v823_v32 = vmul.f32 %v714_v19, %v1617_v6 }
  0x54   : >> { %v865_v29 = vpack.c.bf16 %v829_v22, %v827_v49  ;;  %v825_v33 = vmul.f32 %v714_v19, %v1625_v12  ;;  %v706_v34 = vrot.slane %v613_v18, %v1566_v13  ;;  %v702_v23 = vrot.slane %v611_v24, %v1569_v17  ;;  %v945_v18 = vld [vmem:[%s1820_s5] sm:$0xff] (%p368_p12) }
  0x55   : >> { %v864_v35 = vpack.c.bf16 %v826_v26, %v824_v21  ;;  %v820_v31 = vmul.f32 %v710_v28, %v1623_v11  ;;  %v822_v36 = vmul.f32 %v710_v28, %v1627_v14  ;;  %v698_v39 = vrot.slane %v611_v24, %v1566_v13 }
  0x56   : >> { %890 = vmatpush1.bf16.msra.mxu0 %v843_v30  ;;  %v863_v30 = vpack.c.bf16 %v825_v33, %v823_v32  ;;  %v819_v37 = vmul.f32 %v706_v34, %v1617_v6  ;;  %v821_v38 = vmul.f32 %v706_v34, %v1625_v12  ;;  %v816_v41 = vmul.f32 %v702_v23, %v1623_v11 }
  0x57   : >> { %891 = vmatprep.subr.bf16.mxu0 %v842_v40  ;;  %v862_v40 = vpack.c.bf16 %v822_v36, %v820_v31  ;;  %v818_v42 = vmul.f32 %v702_v23, %v1627_v14  ;;  %v694_v43 = vrot.slane %v603_v57, %v1569_v17  ;;  %v815_v45 = vmul.f32 %v698_v39, %v1617_v6 }
  0x58   : >> { %v861_v44 = vpack.c.bf16 %v821_v38, %v819_v37  ;;  %v690_v46 = vrot.slane %v603_v57, %v1566_v13  ;;  %v686_v51 = vrot.slane %v589_v63, %v1569_v17  ;;  %v682_v55 = vrot.slane %v589_v63, %v1566_v13 }
  0x59   : >> { %v860_v47 = vpack.c.bf16 %v818_v42, %v816_v41  ;;  %v814_v50 = vmul.f32 %v694_v43, %v1627_v14  ;;  %v1217_v13 = vcombine.low %v1555_v5, %v1555_v5  ;;  %v1420_v9 = vmov (%p368_p12), 0  }
  0x5a   : >> { %892 = vmatpush1.bf16.msra.mxu0 %v841_v27  ;;  %v817_v27 = vmul.f32 %v698_v39, %v1625_v12  ;;  %v813_v54 = vmul.f32 %v690_v46, %v1625_v12  ;;  %v808_v57 = vmul.f32 %v686_v51, %v1623_v11  ;;  %v807_v60 = vmul.f32 %v682_v55, %v1617_v6 }
  0x5b   : >> { %893 = vmatprep.subr.bf16.mxu0 %v840_v48  ;;  %v812_v48 = vmul.f32 %v694_v43, %v1623_v11  ;;  %v809_v17 = vmul.f32 %v682_v55, %v1625_v12  ;;  %1318 = vset.pattern.permute.xlu0 (%p368_p12), %v1420_v9  ;;  %vm996_vm1 = vcmask (%p368_p12), 588800  }
  0x5c   : >> { %v859_v52 = vpack.c.bf16 %v817_v27, %v815_v45  ;;  %948 = vperm.xlu0 (%p368_p12), %1318, %v945_v18  }
  0x5d   : >> { %v858_v56 = vpack.c.bf16 %v814_v50, %v812_v48  ;;  %v855_v62 = vpack.c.bf16 %v809_v17, %v807_v60 }
  0x5e   : >> { %894 = vmatpush1.bf16.msra.mxu0 %v839_v53  ;;  %v811_v53 = vmul.f32 %v690_v46, %v1617_v6 }
  0x5f   : >> { %895 = vmatprep.subr.bf16.mxu0 %v870_v58  ;;  %v810_v58 = vmul.f32 %v686_v51, %v1627_v14 }
  0x60   : >> { %v857_v59 = vpack.c.bf16 %v813_v54, %v811_v53 }
  0x61   : >> { %v856_v61 = vpack.c.bf16 %v810_v58, %v808_v57 }
  0x62   : >> { %896 = vmatpush2.bf16.msra.mxu0 %v869_v1 }
  0x63   : >> { %897 = vmatprep.subr.bf16.mxu0 %v868_v10 }
  0x66   : >> { %898 = vmatpush2.bf16.msra.mxu0 %v867_v20  ;;  %v935_v20 = vld [vmem:[%s1819_s4] sm:$0xf] (%p368_p12) }
  0x67   : >> { %899 = vmatprep.subr.bf16.mxu0 %v866_v25 }
  0x6a   : >> { %900 = vmatpush2.bf16.msra.mxu0 %v865_v29 }
  0x6b   : >> { %901 = vmatprep.subr.bf16.mxu0 %v864_v35 }
  0x6e   : >> { %902 = vmatpush2.bf16.msra.mxu0 %v863_v30 }
  0x6f   : >> { %903 = vmatprep.subr.bf16.mxu0 %v862_v40 }
  0x72   : >> { %904 = vmatpush2.bf16.msra.mxu0 %v861_v44 }
  0x73   : >> { %905 = vmatprep.subr.bf16.mxu0 %v860_v47 }
  0x76   : >> { %906 = vmatpush2.bf16.msra.mxu0 %v859_v52 }
  0x77   : >> { %907 = vmatprep.subr.bf16.mxu0 %v858_v56 }
  0x7a   : >> { %908 = vmatpush2.bf16.msra.mxu0 %v857_v59 }
  0x7b   : >> { %909 = vmatprep.subr.bf16.mxu0 %v856_v61 }
  0x7e   : >> { %910 = vmatpush2.bf16.msra.mxu0 %v855_v62 }
  0x81   : >> { %912 = vmatmul.mubr.bf16.vlgmr.msra.gmra.mxu0 %v1217_v13 }
  0x82   : > { %1039 = vmatprep.mubr.bf16.mxu0 (%p368_p12), %v1420_v9 }
  0xd7   : > { %v949_v49 = vpop.permute.xlu0 (%p368_p12), %948 }
 0x141   : >> { %v913_v11 = vpop.f32.mrf.mxu0 }
 0x143   : >> { %v915_v63 = vpop.f32.mrf.mxu0  ;;  %370 = sbr.rel (!%p368_p12) target bundleno = 27 (0x1b), region = 99 }
 0x144   : >> { %v1244_v14 = vpack.c.bf16 %v915_v63, %v913_v11 }
 0x145   : >> { %v917_v1 = vpop.f32.mrf.mxu0 }
 0x146   : >> { %934 = vst [vmem:[%s933_s8] sm:$0xff] %v1244_v14  ;;  %s1339_s8 = scalar_lea.vmem (%p368_p12), %s1338_s30, 512 }
 0x147   : >> { %v918_v6 = vpop.f32.mrf.mxu0  ;;  %p1341_p3 = scmp.lt.s32.totalorder (%p368_p12), %s1339_s8, %s1333_s20 }
 0x149   : > { %p1342_p5 = por %p1341_p3, %p1340_p2 }
 0x14b   : > { %p1343_p6 = pnand %p1342_p5, %p1336_p1 }
 0x14d   : > { %v944_v12 = vld [vmem:[#allocation2 + $0x40] sm:$0xff]  ;;  %v1321_v8 = vld [vmem:[#allocation2 + $0x34] ss:$8 sps:$4 sm:$0xff]   ;;  %v1323_v15 = vld [vmem:[#allocation2 + $0x30] ss:$8 sps:$4 sm:$0xff]  }
 0x14e   : > { %v1232_v7 = vcombine.high %v944_v12, %v944_v12  ;;  %v1231_v5 = vcombine.low %v944_v12, %v944_v12  ;;  %v1324_v16 = vld [vmem:[#allocation2 + $0x24] ss:$8 sps:$4 sm:$0xff]   ;;  %v1326_v0 = vld [vmem:[#allocation2 + $0x20] ss:$8 sps:$4 sm:$0xff]   ;;  %v1327_v2 = vld [vmem:[#allocation2 + $0x14] ss:$8 sps:$4 sm:$0xff]  }
 0x14f   : > { %v1329_v3 = vld [vmem:[#allocation2 + $0x10] ss:$8 sps:$4 sm:$0xff]   ;;  %v1330_v4 = vld [vmem:[#allocation2 + $0x4] ss:$8 sps:$4 sm:$0xff]   ;;  %v1332_v19 = vld [vmem:[#allocation2] ss:$8 sps:$4 sm:$0xff]  }
 0x150   : > { %1233 = vmatprep.subr.msk.bf16.mxu0 %vm1000_vm0, %v1232_v7  ;;  %v1002_v10 = vsel %vm1000_vm0, %v1231_v5, 0 }
 0x151   : > { %1014 = vmatpush1.bf16.msra.mxu0 %v1002_v10 }
 0x152   : > { %1015 = vmatprep.subr.bf16.mxu0 %v1321_v8 }
 0x155   : > { %1016 = vmatpush1.bf16.msra.mxu0 %v1323_v15 }
 0x156   : > { %1017 = vmatprep.subr.bf16.mxu0 %v1324_v16 }
 0x159   : > { %1018 = vmatpush1.bf16.msra.mxu0 %v1326_v0 }
 0x15a   : > { %1019 = vmatprep.subr.bf16.mxu0 %v1327_v2 }
 0x15d   : > { %1020 = vmatpush1.bf16.msra.mxu0 %v1329_v3 }
 0x15e   : > { %1021 = vmatprep.subr.bf16.mxu0 %v1330_v4 }
 0x161   : > { %1022 = vmatpush1.bf16.msra.mxu0 %v1332_v19 }
 0x164   : > { %1234 = vmatmul.mubr.msk.bf16.vlgmr.msra.gmra.mxu0 %vm996_vm1, %v935_v20 }
 0x224   : > { %v1041_v22 = vpop.f32.mrf.mxu0 }
 0x225   : > { %v1042_v24 = vadd.f32 %v1041_v22, %v949_v49 }
 0x226   : > { %v1043_v25 = vpop.f32.mrf.mxu0 }
 0x227   : > { %1048 = vst [vmem:[%s1547_s11] sm:$0xff] %v1042_v24  ;;  %v1044_v21 = vadd.f32 %v1043_v25, %v949_v49 }
 0x228   : > { %v1045_v26 = vpop.f32.mrf.mxu0 }
 0x229   : > { %1049 = vst [vmem:[%s1547_s11 + $0x8] sm:$0xff] %v1044_v21 }
 0x22a   : > { %v1046_v28 = vpop.f32.mrf.mxu0 }
 0x22b   : > { %1346 = shalt.err (!%p1343_p6)
}
 0x22c   : > { %s1347_s11 = scalar_lea.hbm %s1766_s18, 256  ;;  %s1351_s0 = scalar_lea.hbm %s1821_s6, 512 }
 0x22d   : > { %p1348_p7 = scmp.ne.s32.totalorder %s1766_s18, %s1347_s11  ;;  %p1352_p11 = scmp.lt.s32.totalorder %s1766_s18, %s1821_s6 }
 0x22e   : > { %p1353_p12 = scmp.lt.s32.totalorder %s1351_s0, %s1347_s11 }
 0x22f   : > { %p1349_p9 = pnand %p1348_p7, %p1497_p4 }
 0x230   : > { %p1354_p13 = por %p1353_p12, %p1352_p11 }
 0x231   : > { %p1350_p10 = pneg %p1349_p9 }
 0x233   : > { %p1355_p0 = pnand %p1354_p13, %p1350_p10 }
 0x235   : > { %1358 = shalt.err (!%p1355_p0)
}
 0x236   : > { %1251 = dma.vmem_to_hbm [thread:$0]  (%p1497_p4), %s1768_s16, 256, %s1766_s18, %s1051_s24  }
 0x237 PF: > { %p1257_p1 = scmp.ge.s32.totalorder %s1413_s26, 2  ;;  %s1079_s17 = sand.u32 1, %s1393_s21  }
 0x238   : > { %s1080_s14 = scalar_lea.sflag [#allocation4], %s1079_s17 }
 0x239   : > { %p1254_p2 = pnand %p1257_p1, %p1504_p8 }
 0x23b   : > { %p1255_p3 = pneg %p1254_p2 }
 0x23d   : > { %1388 = dma.done.wait (%p1255_p3), %s1080_s14, 256  }
 0x23e   : > { %1390 = vsyncadd (%p1255_p3), %s1080_s14, 4294967040  ;;  %s19_s26 = sadd.s32 1, %s1413_s26   ;;  %s1828_s21 = smov %s1397_s22 }
 0x23f   : > { %p16_p5 = scmp.ge.s32.totalorder %s19_s26, 4   ;;  %s1829_s22 = smov %s1401_s23 }
 0x240   : > { %s1830_s23 = smov %s1510_s10  ;;  %s1831_s24 = smov %s1409_s25 }
 0x241   : > { %s1832_s25 = smov %s1834_s29  ;;  %18 = sbr.rel (!%p16_p5) target bundleno = 6 (0x6), region = 110 }
 0x246   :  { %1085 = vsyncpa [#allocation4], 1 }
 0x247   :  { %1087 = vsyncpa [#allocation4 + $0x1], 1 }

</bundles_post_ra>
